<compile_context>
chip_gen: v7x
topology: tpu7x:2x2x1
jax: 0.10.0
libtpu: 0.0.40
codegen_flags: <defaults>
</compile_context>

<pallas_src>
import functools

import jax
import jax.numpy as jnp
from jax.experimental import pallas as pl
from jax.experimental.pallas import tpu as pltpu


def _round_up(x: int, m: int) -> int:
    return ((x + m - 1) // m) * m


def _choose_tile_b(batch: int, num_classes: int, itemsize: int) -> int:
    """Pick the batch tile: ~2 MiB of native-dtype logits per grid step, capped
    by an explicit VMEM footprint budget and (when possible) by batch/2 so the
    parallel grid axis can still shard across two TensorCores (v7x)."""
    target_tile_bytes = 2 * 1024 * 1024     # native logits bytes per step
    vmem_budget = 20 * 1024 * 1024          # total in-kernel footprint target

    # VMEM bytes the kernel holds per batch row:
    #   2x double-buffered native logits tile
    #   ~3x live f32 (TILE_B, C) intermediates (upcast, exp_shift, where temp)
    #   2x double-buffered (TILE_B, 1) i32 targets, lane-padded to 128 lanes
    per_row = (2 * num_classes * itemsize
               + 3 * num_classes * 4
               + 2 * 128 * 4)
    cap_vmem = max(8, (vmem_budget // per_row) // 8 * 8)

    tile = max(8, (target_tile_bytes // max(1, num_classes * itemsize)) // 8 * 8)
    tile = min(tile, cap_vmem, 4096)

    # Don't exceed the batch (keep the well-trodden "partial last block" case:
    # tile <= batch rounded *down* to 8 when batch >= 8).
    tile = min(tile, max(8, (batch // 8) * 8))
    if batch >= 16:
        # keep >= 2 grid steps so megacore sharding on v7x is not a no-op.
        tile = min(tile, _round_up(-(-batch // 2), 8))
    return max(8, tile)


def _focal_loss_kernel(logits_ref, targets_ref, alpha_ref, out_ref, *, gamma, batch_size):
    # logits_ref: (TILE_B, C) native dtype | targets_ref: (TILE_B, 1) i32
    # alpha_ref:  (1, C) f32               | out_ref:     (1, 1, TILE_B) f32
    i = pl.program_id(0)

    logits = logits_ref[...].astype(jnp.float32)            # compute in f32
    tgt = targets_ref[...]                                   # (TILE_B, 1) int32
    tb, c = logits.shape

    # target mask via iota-compare (no gather on TPU)
    cls_idx = jax.lax.broadcasted_iota(jnp.int32, (tb, c), dimension=1)
    is_tgt = cls_idx == tgt                                   # (TILE_B, C) bool

    # numerically-stable softmax pieces; the single full-block pass
    m = jnp.max(logits, axis=-1, keepdims=True)               # (TILE_B, 1)
    exp_shift = jnp.exp(logits - m)                           # (TILE_B, C)
    sum_exp = jnp.sum(exp_shift, axis=-1, keepdims=True)      # (TILE_B, 1)
    lse = jnp.log(sum_exp) + m                                # (TILE_B, 1)

    # select the target column FIRST (masked reductions), then per-row math
    logit_t = jnp.sum(jnp.where(is_tgt, logits, 0.0), axis=-1, keepdims=True)
    exp_t = jnp.sum(jnp.where(is_tgt, exp_shift, 0.0), axis=-1, keepdims=True)
    alpha_row = alpha_ref[...].astype(jnp.float32)            # (1, C)
    alpha_t = jnp.sum(jnp.where(is_tgt, alpha_row, 0.0), axis=-1, keepdims=True)

    ce_t = lse - logit_t                                      # (TILE_B, 1)
    pt = exp_t * pl.reciprocal(sum_exp, approx=False)         # reuse the exp pass
    one_minus_pt = jnp.maximum(1.0 - pt, 0.0)                 # clamp: no 0**float NaN
    if isinstance(gamma, int):
        mod = jax.lax.integer_pow(one_minus_pt, gamma)        # VPU multiplies, no EUP pow
    else:
        mod = one_minus_pt ** gamma
    focal_col = alpha_t * mod * ce_t                          # (TILE_B, 1)

    # lane-dense per-row output; mask rows past the true batch size
    focal_out = focal_col.reshape(1, 1, tb)                   # (1, 1, TILE_B)
    lane_ids = jax.lax.broadcasted_iota(jnp.int32, (1, 1, tb), dimension=2)
    valid = (i * tb + lane_ids) < batch_size
    out_ref[...] = jnp.where(valid, focal_out, 0.0)


def focal_loss(logits, targets, alpha=None, *, gamma=2, reduction="mean"):
    """logits: (B, C), targets: (B,) int, alpha: (C,) or None."""
    B, C = logits.shape
    targets_2d = targets.astype(jnp.int32).reshape(B, 1)
    if alpha is None:
        alpha_2d = jnp.ones((1, C), jnp.float32)
    else:
        alpha_2d = jnp.asarray(alpha, jnp.float32).reshape(1, C)

    tile_b = _choose_tile_b(B, C, jnp.dtype(logits.dtype).itemsize)
    num_tiles = -(-B // tile_b)   # last block may be partial; Pallas handles the edge

    kernel = functools.partial(_focal_loss_kernel, gamma=gamma, batch_size=B)

    out = pl.pallas_call(
        kernel,
        out_shape=jax.ShapeDtypeStruct((num_tiles, 1, tile_b), jnp.float32),
        grid=(num_tiles,),
        in_specs=[
            pl.BlockSpec((tile_b, C), lambda i: (i, 0)),   # logits, native dtype
            pl.BlockSpec((tile_b, 1), lambda i: (i, 0)),   # targets (lane-padded; budgeted)
            pl.BlockSpec((1, C), lambda i: (0, 0)),        # alpha, resident
        ],
        out_specs=pl.BlockSpec((1, 1, tile_b), lambda i: (i, 0, 0)),
        compiler_params=pltpu.CompilerParams(
            dimension_semantics=("parallel",),             # megacore on v7x
            vmem_limit_bytes=32 * 1024 * 1024,             # explicit: safe on v5e/v6e/v7x
        ),
    )(logits, targets_2d, alpha_2d)

    flat = out.reshape(-1)          # masked rows are exact zeros; order == row order
    if reduction == "mean":
        return jnp.sum(flat) / B
    elif reduction == "sum":
        return jnp.sum(flat)
    return flat[:B]                 # 'none': per-row losses in original order


def _reference(logits, targets, alpha, gamma=2, reduction="mean"):
    # pure-JAX reference mirroring the PyTorch forward
    lse = jax.nn.logsumexp(logits, axis=-1)
    ce = lse - jnp.take_along_axis(logits, targets[:, None].astype(jnp.int32), axis=-1)[:, 0]
    pt = jnp.exp(-ce)
    focal = (1.0 - pt) ** gamma * ce
    if alpha is not None:
        focal = alpha[targets] * focal
    if reduction == "mean":
        return jnp.mean(focal)
    if reduction == "sum":
        return jnp.sum(focal)
    return focal


if __name__ == "__main__":
    key = jax.random.PRNGKey(0)
    k1, k2, k3, k4 = jax.random.split(key, 4)

    # Small shapes consistent with the module: (batch, num_classes) logits.
    B, C = 8, 4
    logits = jax.random.normal(k1, (B, C), dtype=jnp.float32)
    targets = jax.random.randint(k2, (B,), 0, C, dtype=jnp.int32)
    alpha = jnp.linspace(0.5, 1.0, C, dtype=jnp.float32)

    loss = focal_loss(logits, targets, alpha, gamma=2, reduction="mean")
    loss = jax.block_until_ready(loss)
    ref = _reference(logits, targets, alpha, gamma=2, reduction="mean")
    assert jnp.allclose(loss, ref, rtol=1e-5, atol=1e-5), (loss, ref)

    loss_sum = focal_loss(logits, targets, None, gamma=2, reduction="sum")
    loss_sum = jax.block_until_ready(loss_sum)
    ref_sum = _reference(logits, targets, None, gamma=2, reduction="sum")
    assert jnp.allclose(loss_sum, ref_sum, rtol=1e-5, atol=1e-5), (loss_sum, ref_sum)

    # Tail check: batch not a multiple of 8 (partial last block), reduction='none'.
    B2 = 13
    logits2 = jax.random.normal(k3, (B2, C), dtype=jnp.float32)
    targets2 = jax.random.randint(k4, (B2,), 0, C, dtype=jnp.int32)
    per_row = focal_loss(logits2, targets2, alpha, gamma=2, reduction="none")
    per_row = jax.block_until_ready(per_row)
    ref2 = _reference(logits2, targets2, alpha, gamma=2, reduction="none")
    assert per_row.shape == (B2,)
    assert jnp.allclose(per_row, ref2, rtol=1e-5, atol=1e-5), (per_row, ref2)

    print("KERNEL_OK")
</pallas_src>

<mosaic_0001>
module attributes {stable_mosaic.version = 11 : i64} {
  func.func @_focal_loss_kernel(%arg0: i32, %arg1: memref<8x4xf32, #tpu.memory_space<vmem>>, %arg2: memref<8x1xi32, #tpu.memory_space<vmem>>, %arg3: memref<1x4xf32, #tpu.memory_space<vmem>>, %arg4: memref<1x1x8xf32, #tpu.memory_space<vmem>>) attributes {dimension_semantics = [#tpu.dimension_semantics<parallel>], iteration_bounds = array<i64: 1>, scalar_prefetch = 0 : i64, scratch_operands = 0 : i64, tpu.core_type = #tpu.core_type<tc>, window_params = [{transform_indices = @transform_0, window_bounds = array<i64: 8, 4>}, {transform_indices = @transform_1, window_bounds = array<i64: 8, 1>}, {pipeline_mode = #tpu.pipeline_mode<synchronous>, transform_indices = @transform_2, window_bounds = array<i64: 1, 4>}, {transform_indices = @transform_3, window_bounds = array<i64: 1, 1, 8>}]} {
    %c0 = arith.constant 0 : index
    %c0_0 = arith.constant 0 : index
    %0 = vector.load %arg1[%c0, %c0_0] : memref<8x4xf32, #tpu.memory_space<vmem>>, vector<8x4xf32>
    %c0_1 = arith.constant 0 : index
    %c0_2 = arith.constant 0 : index
    %1 = vector.load %arg2[%c0_1, %c0_2] : memref<8x1xi32, #tpu.memory_space<vmem>>, vector<8x1xi32>
    %2 = tpu.iota {dimensions = array<i32: 1>} : vector<8x4xi32>
    %3 = vector.broadcast %1 : vector<8x1xi32> to vector<8x4xi32>
    %4 = arith.cmpi eq, %2, %3 : vector<8x4xi32>
    %cst = arith.constant dense<0xFF800000> : vector<8xf32>
    %5 = vector.multi_reduction <maximumf>, %0, %cst [1] : vector<8x4xf32> to vector<8xf32>
    %6 = vector.shape_cast %5 : vector<8xf32> to vector<8x1xf32>
    %7 = vector.broadcast %6 : vector<8x1xf32> to vector<8x4xf32>
    %8 = arith.subf %0, %7 : vector<8x4xf32>
    %9 = math.exp %8 : vector<8x4xf32>
    %cst_3 = arith.constant dense<0.000000e+00> : vector<8xf32>
    %10 = vector.multi_reduction <add>, %9, %cst_3 [1] : vector<8x4xf32> to vector<8xf32>
    %11 = vector.shape_cast %10 : vector<8xf32> to vector<8x1xf32>
    %12 = math.log %11 : vector<8x1xf32>
    %13 = arith.addf %12, %6 : vector<8x1xf32>
    %cst_4 = arith.constant 0.000000e+00 : f32
    %14 = vector.broadcast %cst_4 : f32 to vector<8x4xf32>
    %15 = arith.select %4, %0, %14 : vector<8x4xi1>, vector<8x4xf32>
    %cst_5 = arith.constant dense<0.000000e+00> : vector<8xf32>
    %16 = vector.multi_reduction <add>, %15, %cst_5 [1] : vector<8x4xf32> to vector<8xf32>
    %17 = vector.shape_cast %16 : vector<8xf32> to vector<8x1xf32>
    %cst_6 = arith.constant 0.000000e+00 : f32
    %18 = vector.broadcast %cst_6 : f32 to vector<8x4xf32>
    %19 = arith.select %4, %9, %18 : vector<8x4xi1>, vector<8x4xf32>
    %cst_7 = arith.constant dense<0.000000e+00> : vector<8xf32>
    %20 = vector.multi_reduction <add>, %19, %cst_7 [1] : vector<8x4xf32> to vector<8xf32>
    %21 = vector.shape_cast %20 : vector<8xf32> to vector<8x1xf32>
    %c0_8 = arith.constant 0 : index
    %c0_9 = arith.constant 0 : index
    %22 = vector.load %arg3[%c0_8, %c0_9] : memref<1x4xf32, #tpu.memory_space<vmem>>, vector<1x4xf32>
    %cst_10 = arith.constant 0.000000e+00 : f32
    %23 = vector.shape_cast %22 : vector<1x4xf32> to vector<1x4xf32>
    %24 = vector.broadcast %23 : vector<1x4xf32> to vector<8x4xf32>
    %25 = vector.broadcast %cst_10 : f32 to vector<8x4xf32>
    %26 = arith.select %4, %24, %25 : vector<8x4xi1>, vector<8x4xf32>
    %cst_11 = arith.constant dense<0.000000e+00> : vector<8xf32>
    %27 = vector.multi_reduction <add>, %26, %cst_11 [1] : vector<8x4xf32> to vector<8xf32>
    %28 = vector.shape_cast %27 : vector<8xf32> to vector<8x1xf32>
    %29 = arith.subf %13, %17 : vector<8x1xf32>
    %30 = tpu.reciprocal %11 : vector<8x1xf32> -> vector<8x1xf32>
    %31 = arith.mulf %21, %30 : vector<8x1xf32>
    %cst_12 = arith.constant 1.000000e+00 : f32
    %32 = vector.broadcast %cst_12 : f32 to vector<8x1xf32>
    %33 = arith.subf %32, %31 : vector<8x1xf32>
    %cst_13 = arith.constant 0.000000e+00 : f32
    %34 = vector.broadcast %cst_13 : f32 to vector<8x1xf32>
    %35 = arith.maximumf %33, %34 : vector<8x1xf32>
    %36 = arith.mulf %35, %35 : vector<8x1xf32>
    %37 = arith.mulf %28, %36 : vector<8x1xf32>
    %38 = arith.mulf %37, %29 : vector<8x1xf32>
    %39 = vector.shape_cast %38 : vector<8x1xf32> to vector<1x1x8xf32>
    %40 = tpu.iota {dimensions = array<i32: 2>} : vector<1x1x8xi32>
    %c8_i32 = arith.constant 8 : i32
    %41 = arith.muli %arg0, %c8_i32 : i32
    %42 = vector.broadcast %41 : i32 to vector<1x1x8xi32>
    %43 = arith.addi %42, %40 : vector<1x1x8xi32>
    %c8_i32_14 = arith.constant 8 : i32
    %44 = vector.broadcast %c8_i32_14 : i32 to vector<1x1x8xi32>
    %45 = arith.cmpi slt, %43, %44 : vector<1x1x8xi32>
    %cst_15 = arith.constant 0.000000e+00 : f32
    %46 = vector.broadcast %cst_15 : f32 to vector<1x1x8xf32>
    %47 = arith.select %45, %39, %46 : vector<1x1x8xi1>, vector<1x1x8xf32>
    %c0_16 = arith.constant 0 : index
    %c0_17 = arith.constant 0 : index
    %c0_18 = arith.constant 0 : index
    %48 = vector.load %arg4[%c0_16, %c0_17, %c0_18] : memref<1x1x8xf32, #tpu.memory_space<vmem>>, vector<1x1x8xf32>
    tpu.vector_store %arg4[%c0_16, %c0_17, %c0_18], %47 {strides = array<i32>} : memref<1x1x8xf32, #tpu.memory_space<vmem>>, vector<1x1x8xf32>,
    return
  }
  func.func @transform_0(%arg0: i32) -> (i32, i32) {
    %c0_i32 = arith.constant 0 : i32
    %c0_i32_0 = arith.constant 0 : i32
    return %arg0, %c0_i32 : i32, i32
  }
  func.func @transform_1(%arg0: i32) -> (i32, i32) {
    %c0_i32 = arith.constant 0 : i32
    %c0_i32_0 = arith.constant 0 : i32
    return %arg0, %c0_i32 : i32, i32
  }
  func.func @transform_2(%arg0: i32) -> (i32, i32) {
    %c0_i32 = arith.constant 0 : i32
    %c0_i32_0 = arith.constant 0 : i32
    %c0_i32_1 = arith.constant 0 : i32
    return %c0_i32, %c0_i32_0 : i32, i32
  }
  func.func @transform_3(%arg0: i32) -> (i32, i32, i32) {
    %c0_i32 = arith.constant 0 : i32
    %c0_i32_0 = arith.constant 0 : i32
    %c0_i32_1 = arith.constant 0 : i32
    return %arg0, %c0_i32, %c0_i32_0 : i32, i32, i32
  }
}

</mosaic_0001>

<bundles_post_ra>
// kernel: tpu_custom_call.1
= control target key start
LH: loop header
LB: loop body
LE: loop exit
PB: predicated region body
PF: predicated region fallthrough
CT: control target
= control target key end

     0   :  { %vm23_vm0 = vcmask 31744   ;;  %s172_s0 = inlined_call_operand.vmem [shape: f32[8,4], index: 0, kind: input, shape index: {}]   ;;  %s173_s1 = inlined_call_operand.vmem [shape: s32[8,1], index: 1, kind: input, shape index: {}]   ;;  %s174_s2 = inlined_call_operand.vmem [shape: f32[1,4], index: 2, kind: input, shape index: {}]   ;;  %s175_s3 = inlined_call_operand.hbm [shape: f32[1,1,8], index: 3, kind: output, shape index: {}]  }
   0x1   :  { %v15_v0 = vld [vmem:[%s172_s0] sm:$0xff] }
   0x2   :  { %8 = vsyncpa [#allocation3], 0  ;;  %v24_v1 = vsel %vm23_vm0, %v15_v0, -inf  ;;  %v124_v2 = vmov 0   ;;  %v16_v3 = vld [vmem:[%s173_s1] sm:$0xff]  ;;  %v17_v7 = vlaneseq  ;;  %s125_s1 = smov [#allocation2]  }
   0x3   :  { %93 = vset.pattern.permute.xlu0 %v124_v2  ;;  %v90_v15 = vld [vmem:[%s174_s2] ss:$0 sm:$0xff]  ;;  %s82_s2 = sshll.u32 %s125_s1, 4  ;;  %vm74_vm3 = vcmask 57344   ;;  %s83_s2 = int_to_ptr.vmem [resolvable:$true] %s82_s2 }
   0x4   :  { %25 = vmax.xlane.f32.xlu0 %v24_v1  ;;  %v18_v8 = vand.u32 127, %v17_v7  ;;  %v69_v29 = vshrl.u32 %v17_v7, 7  ;;  %s100_s17 = scalar_lea.vmem %s83_s2, 16  ;;  %s104_s18 = scalar_lea.vmem %s83_s2, 32 }
   0x5   :  { %p101_p0 = scmp.ne.s32.totalorder %s83_s2, %s100_s17  ;;  %p105_p1 = scmp.lt.s32.totalorder %s83_s2, %s83_s2 }
   0x6   :  { %v70_v33 = vsub.s32 %v18_v8, %v69_v29  ;;  %vm66_vm2 = vcmp.lt.s32.totalorder %v18_v8, 8  ;;  %p106_p2 = scmp.lt.s32.totalorder %s104_s18, %s100_s17 }
   0x8   :  { %p107_p3 = por %p106_p2, %p105_p1 }
   0xa   :  { %p108_p4 = pnand %p107_p3, %p101_p0 }
  0x1a   :  { %20 = vperm.xlu0 %93, %v16_v3  }
  0x91   :  { %v26_v4 = vpop.xlane.xlu0 %25 }
  0x92   :  { %v27_v5 = vsub.f32 %v15_v0, %v26_v4 }
  0x94   :  { %v28_v6 = vmul.f32 1.442695, %v27_v5 }
  0x96   :  { %94 = vpow2.f32 %v28_v6 }
  0x99   :  { %v21_v9 = vpop.permute.xlu0 %20 }
  0x9a   :  { %vm22_vm1 = vcmp.eq.s32.totalorder %v18_v8, %v21_v9 }
  0x9b   :  { %v36_v13 = vsel %vm22_vm1, %v15_v0, 0.0  ;;  %v51_v17 = vsel %vm22_vm1, %v90_v15, 0.0 }
  0x9c   :  { %v37_v16 = vsel %vm23_vm0, %v36_v13, 0.0  ;;  %v52_v18 = vsel %vm23_vm0, %v51_v17, 0.0 }
  0xa0   :  { %v95_v10 = vpop.eup %94 }
  0xa1   :  { %v30_v11 = vsel %vm23_vm0, %v95_v10, 0.0  ;;  %v40_v12 = vsel %vm22_vm1, %v95_v10, 0.0 }
  0xa2   :  { %31 = vadd.xlane.f32.xlu1 %v30_v11  ;;  %v41_v14 = vsel %vm23_vm0, %v40_v12, 0.0 }
  0xa6   :  { %42 = vadd.xlane.f32.xlu1 %v41_v14 }
  0xaa   :  { %38 = vadd.xlane.f32.xlu1 %v37_v16 }
  0xae   :  { %53 = vadd.xlane.f32.xlu1 %v52_v18 }
 0x12f   :  { %v32_v19 = vpop.xlane.xlu1 %31 }
 0x130   :  { %96 = vlog2.f32 %v32_v19 }
 0x131   :  { %98 = vrcp.f32 %v32_v19 }
 0x133   :  { %v43_v20 = vpop.xlane.xlu1 %42 }
 0x137   :  { %v39_v25 = vpop.xlane.xlu1 %38 }
 0x13a   :  { %v97_v21 = vpop.eup %96 }
 0x13b   :  { %v99_v22 = vpop.eup %98  ;;  %v34_v24 = vmul.f32 0.6931472, %v97_v21  ;;  %v54_v31 = vpop.xlane.xlu1 %53 }
 0x13c   :  { %v57_v23 = vmul.f32 %v99_v22, %v43_v20 }
 0x13d   :  { %v35_v28 = vadd.f32 %v34_v24, %v26_v4 }
 0x13e   :  { %v58_v26 = vsub.f32 1.0, %v57_v23 }
 0x13f   :  { %v55_v32 = vsub.f32 %v35_v28, %v39_v25 }
 0x140   :  { %v59_v27 = vmax.f32 %v58_v26, 0.0 }
 0x142   :  { %v60_v30 = vmul.f32 %v59_v27, %v59_v27 }
 0x144   :  { %v61_v34 = vmul.f32 %v60_v30, %v54_v31 }
 0x146   :  { %v62_v35 = vmul.f32 %v61_v34, %v55_v32 }
 0x148   :  { %v71_v36 = vrot.slane %v62_v35, %v70_v33 }
 0x14a   :  { %v73_v37 = vsel %vm66_vm2, %v71_v36, 0.0 }
 0x14b   :  { %75 = vst.msk [vmem:[#allocation2] sm:$0x1] %vm74_vm3, %v73_v37 }
 0x14c   :  { %111 = shalt.err (!%p108_p4)
}
 0x14d   :  { %s112_s21 = scalar_lea.hbm %s175_s3, 16 }
 0x14e   :  { %p113_p5 = scmp.ne.s32.totalorder %s175_s3, %s112_s21  ;;  %p116_p6 = scmp.lt.u32.totalorder %s112_s21, %s175_s3 }
 0x150   :  { %p118_p7 = pnand %p116_p6, %p113_p5 }
 0x152   :  { %121 = shalt.err (!%p118_p7)
}
 0x153   :  { %85 = dma.vmem_to_hbm [thread:$0]  %s83_s2, 16, %s175_s3, [#allocation3]  }
 0x154   :  { %122 = dma.done.wait [#allocation3], 16  }
 0x155   :  { %123 = vsyncadd [#allocation3], 4294967280 }
 0x156   :  { %89 = vsyncpa [#allocation3], 1 }

</bundles_post_ra>
